<compile_context>
chip_gen: v6e
topology: v6e:2x2x1
jax: 0.10.0
libtpu: 0.0.40
codegen_flags: <defaults>
</compile_context>

<pallas_src>
import functools

import jax
import jax.numpy as jnp
import numpy as np
from jax.experimental import pallas as pl
from jax.experimental.pallas import tpu as pltpu


def _dilate_kernel(col_ref, x_ref, o_ref, *, out_w, P, pad):
    """Window max over (2*pad+1)^2, stride 1, -inf border, on flattened planes.

    col_ref: (1, P) int32 column index of every flat position (resident block).
    x_ref / o_ref: (B, P) blocks of B flattened (out_h*out_w) planes.
    """
    x = x_ref[...].astype(jnp.float32)                        # (B, P)
    col = col_ref[...]                                        # (1, P)
    pos = jax.lax.broadcasted_iota(jnp.int32, col.shape, 1)   # (1, P)
    row_key = pos - col                                       # == row * out_w
    neg_inf = jnp.float32(-jnp.inf)

    shifts_w = [s % P for d in range(1, pad + 1) for s in (d, -d)]
    shifts_h = [s % P for d in range(1, pad + 1) for s in (d * out_w, -d * out_w)]

    # Width-direction window max: accept only same-row sources within +-pad cols.
    row_max = x
    for s in shifts_w:
        xs = pltpu.roll(x, shift=s, axis=1)
        cs = pltpu.roll(col, shift=s, axis=1)
        ps = pltpu.roll(pos, shift=s, axis=1)
        ok = ((ps - cs) == row_key) & (jnp.abs(cs - col) <= pad)
        row_max = jnp.maximum(row_max, jnp.where(ok, xs, neg_inf))

    # Height-direction window max: accept only same-column sources within +-pad rows.
    out = row_max
    for s in shifts_h:
        xs = pltpu.roll(row_max, shift=s, axis=1)
        cs = pltpu.roll(col, shift=s, axis=1)
        ps = pltpu.roll(pos, shift=s, axis=1)
        ok = (cs == col) & (jnp.abs(ps - pos) <= pad * out_w)
        out = jnp.maximum(out, jnp.where(ok, xs, neg_inf))

    o_ref[...] = out.astype(o_ref.dtype)


def baseline_unpool2d(x, indices, size, in_ks, stride=2, block_b=8):
    """Pallas/JAX equivalent of BaselineUnpool2D(in_ks, stride).forward(x, indices, size)."""
    del stride  # only used by the torch MaxPool that produced `indices`
    N, C, H_in, W_in = x.shape
    if in_ks % 2 == 1:
        up_h, up_w = size[0] + in_ks - 1, size[1] + in_ks - 1
        off_h = off_w = in_ks // 2
        out_h, out_w = up_h - 2 * off_h, up_w - 2 * off_w
    else:
        up_h, up_w = size[0] + 1, size[1] + 1
        off_h = off_w = 0
        out_h, out_w = up_h - in_ks // 2, up_w - in_ks // 2

    NC, K, P = N * C, H_in * W_in, out_h * out_w
    pad = (2 * in_ks - 1) // 2          # unfold radius == in_ks - 1
    if pad > 0:
        assert min(out_h, out_w) > 2 * pad, "plane too small for this kernel"

    # ---- Stage 1 (XLA): MaxUnpool2d scatter with the _unpad crop fused in ----
    # Remap full-grid flat indices -> cropped-output flat indices once; out-of-crop
    # entries get an OOB target and are dropped (duplicate indices: last-write-wins,
    # same as torch's overwrite semantics for MaxPool-produced unique indices).
    idx = indices.reshape(NC, K).astype(jnp.int32)
    r = idx // up_w - off_h
    c = idx % up_w - off_w
    keep = (r >= 0) & (r < out_h) & (c >= 0) & (c < out_w)
    tgt = jnp.where(keep, r * out_w + c, P)          # P == out of range -> dropped
    scat = jnp.zeros((NC, P), jnp.float32)
    scat = scat.at[jnp.arange(NC)[:, None], tgt].set(
        x.reshape(NC, K).astype(jnp.float32), mode="drop")

    # ---- Stage 2 (Pallas): Unfold(2*in_ks-1) + max over window (dilation) ----
    B = block_b
    NCp = ((NC + B - 1) // B) * B
    if NCp != NC:
        scat = jnp.pad(scat, ((0, NCp - NC), (0, 0)))
    col = (jnp.arange(P, dtype=jnp.int32) % out_w).reshape(1, P)

    kernel = functools.partial(_dilate_kernel, out_w=out_w, P=P, pad=pad)
    out = pl.pallas_call(
        kernel,
        out_shape=jax.ShapeDtypeStruct((NCp, P), x.dtype),
        grid=(NCp // B,),
        in_specs=[
            pl.BlockSpec((1, P), lambda i: (0, 0)),   # coordinate constants: resident
            pl.BlockSpec((B, P), lambda i: (i, 0)),   # B planes / step, lane-dense
        ],
        out_specs=pl.BlockSpec((B, P), lambda i: (i, 0)),
        compiler_params=pltpu.CompilerParams(dimension_semantics=("parallel",)),
    )(col, scat)

    return out[:NC].reshape(N, C, out_h, out_w)


def reference_unpool2d(x, indices, size, in_ks):
    """Plain-JAX mirror of BaselineUnpool2D.forward (MaxUnpool2d -> crop -> Unfold+max)."""
    N, C, _, _ = x.shape
    if in_ks % 2 == 1:
        up_h, up_w = size[0] + in_ks - 1, size[1] + in_ks - 1
    else:
        up_h, up_w = size[0] + 1, size[1] + 1
    NC = N * C
    flat = jnp.zeros((NC, up_h * up_w), x.dtype)
    flat = flat.at[jnp.arange(NC)[:, None],
                   indices.reshape(NC, -1).astype(jnp.int32)].set(x.reshape(NC, -1))
    full = flat.reshape(N, C, up_h, up_w)
    unpad = in_ks // 2
    if in_ks % 2 == 1:
        crop = full[:, :, unpad:-unpad, unpad:-unpad]
    else:
        crop = full[:, :, :-unpad, :-unpad]
    out_ks = 2 * in_ks - 1
    pad = out_ks // 2
    H, W = crop.shape[2], crop.shape[3]
    padded = jnp.pad(crop, ((0, 0), (0, 0), (pad, pad), (pad, pad)),
                     constant_values=-jnp.inf)
    wins = [padded[:, :, dy:dy + H, dx:dx + W]
            for dy in range(out_ks) for dx in range(out_ks)]
    return jnp.max(jnp.stack(wins, axis=0), axis=0)


if __name__ == "__main__":
    key = jax.random.PRNGKey(0)
    kx, kd = jax.random.split(key)

    N, C = 2, 4
    size = (16, 16)                       # original (pre-pool) spatial size
    in_ks, stride = 2, 2
    H_in, W_in = size[0] // stride, size[1] // stride     # pooled input: 8 x 8

    x = jax.random.normal(kx, (N, C, H_in, W_in), jnp.float32)

    # Synthetic max-pool indices: one position per 2x2 window (unique per plane),
    # flat offsets < up_h*up_w, interpreted against the unpool output size exactly
    # like torch.nn.MaxUnpool2d does.
    d = jax.random.randint(kd, (2, N, C, H_in, W_in), 0, 2)
    rows = jnp.arange(H_in)[:, None] * stride + d[0]
    cols = jnp.arange(W_in)[None, :] * stride + d[1]
    indices = rows * size[1] + cols

    fwd = jax.jit(baseline_unpool2d,
                  static_argnames=("size", "in_ks", "stride", "block_b"))
    out = jax.block_until_ready(fwd(x, indices, size=size, in_ks=in_ks, stride=stride))

    ref = reference_unpool2d(x, indices, size, in_ks)
    assert out.shape == (N, C, size[0], size[1]), out.shape
    np.testing.assert_allclose(np.asarray(out), np.asarray(ref), rtol=1e-6, atol=1e-6)
    print("KERNEL_OK")
</pallas_src>

<mosaic_0001>
module attributes {stable_mosaic.version = 11 : i64} {
  func.func @_dilate_kernel(%arg0: i32, %arg1: memref<1x256xi32, #tpu.memory_space<vmem>>, %arg2: memref<8x256xf32, #tpu.memory_space<vmem>>, %arg3: memref<8x256xf32, #tpu.memory_space<vmem>>) attributes {dimension_semantics = [#tpu.dimension_semantics<parallel>], iteration_bounds = array<i64: 1>, scalar_prefetch = 0 : i64, scratch_operands = 0 : i64, tpu.core_type = #tpu.core_type<tc>, window_params = [{pipeline_mode = #tpu.pipeline_mode<synchronous>, transform_indices = @transform_0, window_bounds = array<i64: 1, 256>}, {transform_indices = @transform_1, window_bounds = array<i64: 8, 256>}, {transform_indices = @transform_2, window_bounds = array<i64: 8, 256>}]} {
    %c0 = arith.constant 0 : index
    %c0_0 = arith.constant 0 : index
    %0 = vector.load %arg2[%c0, %c0_0] : memref<8x256xf32, #tpu.memory_space<vmem>>, vector<8x256xf32>
    %c0_1 = arith.constant 0 : index
    %c0_2 = arith.constant 0 : index
    %1 = vector.load %arg1[%c0_1, %c0_2] : memref<1x256xi32, #tpu.memory_space<vmem>>, vector<1x256xi32>
    %2 = tpu.iota {dimensions = array<i32: 1>} : vector<1x256xi32>
    %3 = arith.subi %2, %1 : vector<1x256xi32>
    %c1_i32 = arith.constant 1 : i32
    %4 = tpu.dynamic_rotate %0 by %c1_i32 dim 1 : vector<8x256xf32>, i32 -> vector<8x256xf32>
    %c1_i32_3 = arith.constant 1 : i32
    %5 = tpu.dynamic_rotate %1 by %c1_i32_3 dim 1 : vector<1x256xi32>, i32 -> vector<1x256xi32>
    %c1_i32_4 = arith.constant 1 : i32
    %6 = tpu.dynamic_rotate %2 by %c1_i32_4 dim 1 : vector<1x256xi32>, i32 -> vector<1x256xi32>
    %7 = arith.subi %6, %5 : vector<1x256xi32>
    %8 = arith.cmpi eq, %7, %3 : vector<1x256xi32>
    %9 = arith.subi %5, %1 : vector<1x256xi32>
    %10 = math.absi %9 : vector<1x256xi32>
    %c1_i32_5 = arith.constant 1 : i32
    %11 = vector.broadcast %c1_i32_5 : i32 to vector<1x256xi32>
    %12 = arith.cmpi sle, %10, %11 : vector<1x256xi32>
    %13 = arith.andi %8, %12 : vector<1x256xi1>
    %cst = arith.constant 0xFF800000 : f32
    %14 = vector.shape_cast %13 : vector<1x256xi1> to vector<1x256xi1>
    %15 = vector.broadcast %14 : vector<1x256xi1> to vector<8x256xi1>
    %16 = vector.broadcast %cst : f32 to vector<8x256xf32>
    %17 = arith.select %15, %4, %16 : vector<8x256xi1>, vector<8x256xf32>
    %18 = arith.maximumf %0, %17 : vector<8x256xf32>
    %c255_i32 = arith.constant 255 : i32
    %19 = tpu.dynamic_rotate %0 by %c255_i32 dim 1 : vector<8x256xf32>, i32 -> vector<8x256xf32>
    %c255_i32_6 = arith.constant 255 : i32
    %20 = tpu.dynamic_rotate %1 by %c255_i32_6 dim 1 : vector<1x256xi32>, i32 -> vector<1x256xi32>
    %c255_i32_7 = arith.constant 255 : i32
    %21 = tpu.dynamic_rotate %2 by %c255_i32_7 dim 1 : vector<1x256xi32>, i32 -> vector<1x256xi32>
    %22 = arith.subi %21, %20 : vector<1x256xi32>
    %23 = arith.cmpi eq, %22, %3 : vector<1x256xi32>
    %24 = arith.subi %20, %1 : vector<1x256xi32>
    %25 = math.absi %24 : vector<1x256xi32>
    %c1_i32_8 = arith.constant 1 : i32
    %26 = vector.broadcast %c1_i32_8 : i32 to vector<1x256xi32>
    %27 = arith.cmpi sle, %25, %26 : vector<1x256xi32>
    %28 = arith.andi %23, %27 : vector<1x256xi1>
    %cst_9 = arith.constant 0xFF800000 : f32
    %29 = vector.shape_cast %28 : vector<1x256xi1> to vector<1x256xi1>
    %30 = vector.broadcast %29 : vector<1x256xi1> to vector<8x256xi1>
    %31 = vector.broadcast %cst_9 : f32 to vector<8x256xf32>
    %32 = arith.select %30, %19, %31 : vector<8x256xi1>, vector<8x256xf32>
    %33 = arith.maximumf %18, %32 : vector<8x256xf32>
    %c16_i32 = arith.constant 16 : i32
    %34 = tpu.dynamic_rotate %33 by %c16_i32 dim 1 : vector<8x256xf32>, i32 -> vector<8x256xf32>
    %c16_i32_10 = arith.constant 16 : i32
    %35 = tpu.dynamic_rotate %1 by %c16_i32_10 dim 1 : vector<1x256xi32>, i32 -> vector<1x256xi32>
    %c16_i32_11 = arith.constant 16 : i32
    %36 = tpu.dynamic_rotate %2 by %c16_i32_11 dim 1 : vector<1x256xi32>, i32 -> vector<1x256xi32>
    %37 = arith.cmpi eq, %35, %1 : vector<1x256xi32>
    %38 = arith.subi %36, %2 : vector<1x256xi32>
    %39 = math.absi %38 : vector<1x256xi32>
    %c16_i32_12 = arith.constant 16 : i32
    %40 = vector.broadcast %c16_i32_12 : i32 to vector<1x256xi32>
    %41 = arith.cmpi sle, %39, %40 : vector<1x256xi32>
    %42 = arith.andi %37, %41 : vector<1x256xi1>
    %cst_13 = arith.constant 0xFF800000 : f32
    %43 = vector.shape_cast %42 : vector<1x256xi1> to vector<1x256xi1>
    %44 = vector.broadcast %43 : vector<1x256xi1> to vector<8x256xi1>
    %45 = vector.broadcast %cst_13 : f32 to vector<8x256xf32>
    %46 = arith.select %44, %34, %45 : vector<8x256xi1>, vector<8x256xf32>
    %47 = arith.maximumf %33, %46 : vector<8x256xf32>
    %c240_i32 = arith.constant 240 : i32
    %48 = tpu.dynamic_rotate %33 by %c240_i32 dim 1 : vector<8x256xf32>, i32 -> vector<8x256xf32>
    %c240_i32_14 = arith.constant 240 : i32
    %49 = tpu.dynamic_rotate %1 by %c240_i32_14 dim 1 : vector<1x256xi32>, i32 -> vector<1x256xi32>
    %c240_i32_15 = arith.constant 240 : i32
    %50 = tpu.dynamic_rotate %2 by %c240_i32_15 dim 1 : vector<1x256xi32>, i32 -> vector<1x256xi32>
    %51 = arith.cmpi eq, %49, %1 : vector<1x256xi32>
    %52 = arith.subi %50, %2 : vector<1x256xi32>
    %53 = math.absi %52 : vector<1x256xi32>
    %c16_i32_16 = arith.constant 16 : i32
    %54 = vector.broadcast %c16_i32_16 : i32 to vector<1x256xi32>
    %55 = arith.cmpi sle, %53, %54 : vector<1x256xi32>
    %56 = arith.andi %51, %55 : vector<1x256xi1>
    %cst_17 = arith.constant 0xFF800000 : f32
    %57 = vector.shape_cast %56 : vector<1x256xi1> to vector<1x256xi1>
    %58 = vector.broadcast %57 : vector<1x256xi1> to vector<8x256xi1>
    %59 = vector.broadcast %cst_17 : f32 to vector<8x256xf32>
    %60 = arith.select %58, %48, %59 : vector<8x256xi1>, vector<8x256xf32>
    %61 = arith.maximumf %47, %60 : vector<8x256xf32>
    %c0_18 = arith.constant 0 : index
    %c0_19 = arith.constant 0 : index
    %62 = vector.load %arg3[%c0_18, %c0_19] : memref<8x256xf32, #tpu.memory_space<vmem>>, vector<8x256xf32>
    tpu.vector_store %arg3[%c0_18, %c0_19], %61 {strides = array<i32>} : memref<8x256xf32, #tpu.memory_space<vmem>>, vector<8x256xf32>,
    return
  }
  func.func @transform_0(%arg0: i32) -> (i32, i32) {
    %c0_i32 = arith.constant 0 : i32
    %c0_i32_0 = arith.constant 0 : i32
    %c0_i32_1 = arith.constant 0 : i32
    return %c0_i32, %c0_i32_0 : i32, i32
  }
  func.func @transform_1(%arg0: i32) -> (i32, i32) {
    %c0_i32 = arith.constant 0 : i32
    %c0_i32_0 = arith.constant 0 : i32
    return %arg0, %c0_i32 : i32, i32
  }
  func.func @transform_2(%arg0: i32) -> (i32, i32) {
    %c0_i32 = arith.constant 0 : i32
    %c0_i32_0 = arith.constant 0 : i32
    return %arg0, %c0_i32 : i32, i32
  }
}

</mosaic_0001>

<bundles_post_ra>
// kernel: baseline_unpool2d.1
= control target key start
LH: loop header
LB: loop body
LE: loop exit
PB: predicated region body
PF: predicated region fallthrough
CT: control target
= control target key end

     0   :  { %v14_v0 = vlaneseq  ;;  %s246_s11 = smov 1   ;;  %s247_s12 = smov 127   ;;  %v250_v46 = vmov 0   ;;  %s425_s0 = inlined_call_operand.vmem [shape: s32[1,256], index: 0, kind: input, shape index: {}]   ;;  %s426_s1 = inlined_call_operand.vmem [shape: f32[8,256], index: 1, kind: input, shape index: {}]   ;;  %s427_s2 = inlined_call_operand.vmem [shape: f32[8,256], index: 2, kind: output, shape index: {}]  }
   0x1   :  { %v13_v3 = vld [vmem:[%s425_s0] sm:$0x3]  ;;  %v291_v9 = vld [vmem:[%s426_s1 + $0x8] sm:$0xff]  ;;  %s248_s16 = smov 16   ;;  %s249_s17 = smov 112  }
   0x2   :  { %v266_v1 = vand.u32 127, %v14_v0  ;;  %v18_v2 = vshrl.u32 %v14_v0, 7  ;;  %v297_v10 = vld [vmem:[%s426_s1] sm:$0xff] }
   0x4   :  { %v272_v4 = vadd.s32 128, %v266_v1  ;;  %v274_v5 = vsub.s32 0, %v18_v2  ;;  %v23_v6 = vsub.s32 1, %v18_v2  ;;  %vm31_vm0 = vcmp.lt.s32.totalorder %v266_v1, 1 }
   0x5   :  { %vm82_vm1 = vcmp.lt.s32.totalorder %v266_v1, 127 }
   0x6   :  { %42 = vrot.lane.b32.xlu1 %v272_v4, %s246_s11  ;;  %v278_v7 = vrot.slane %v13_v3, %v274_v5  ;;  %v281_v8 = vrot.slane %v13_v3, %v23_v6 }
   0x8   :  { %34 = vrot.lane.b32.xlu0 %v278_v7, %s246_s11  ;;  %v26_v27 = vsub.s32 %v272_v4, %v281_v8  ;;  %v25_v28 = vsub.s32 %v266_v1, %v278_v7 }
   0xa   :  { %85 = vrot.lane.b32.xlu1 %v278_v7, %s247_s12 }
   0xc   :  { %36 = vrot.lane.b32.xlu0 %v281_v8, %s246_s11 }
   0xe   :  { %87 = vrot.lane.b32.xlu1 %v281_v8, %s247_s12 }
  0x10   :  { %40 = vrot.lane.b32.xlu0 %v266_v1, %s246_s11 }
  0x12   :  { %93 = vrot.lane.b32.xlu1 %v272_v4, %s247_s12 }
  0x14   :  { %91 = vrot.lane.b32.xlu0 %v266_v1, %s247_s12 }
  0x16   :  { %29 = vrot.lane.b32.xlu1 %v291_v9, %s246_s11 }
  0x18   :  { %27 = vrot.lane.b32.xlu0 %v297_v10, %s246_s11 }
  0x1a   :  { %80 = vrot.lane.b32.xlu1 %v291_v9, %s247_s12 }
  0x1c   :  { %78 = vrot.lane.b32.xlu0 %v297_v10, %s247_s12 }
  0x1e   :  { %144 = vrot.lane.b32.xlu1 %v272_v4, %s248_s16 }
  0x20   :  { %142 = vrot.lane.b32.xlu0 %v266_v1, %s248_s16 }
  0x22   :  { %193 = vrot.lane.b32.xlu1 %v272_v4, %s249_s17 }
  0x24   :  { %191 = vrot.lane.b32.xlu0 %v266_v1, %s249_s17 }
  0x26   :  { %138 = vrot.lane.b32.xlu1 %v281_v8, %s248_s16 }
  0x28   :  { %136 = vrot.lane.b32.xlu0 %v278_v7, %s248_s16 }
  0x2a   :  { %187 = vrot.lane.b32.xlu1 %v281_v8, %s249_s17 }
  0x2c   :  { %185 = vrot.lane.b32.xlu0 %v278_v7, %s249_s17 }
  0x78   :  { %v43_v11 = vpop.permute.xlu1 %42 }
  0x7a   :  { %v35_v12 = vpop.permute.xlu0 %34 }
  0x7c   :  { %v86_v13 = vpop.permute.xlu1 %85 }
  0x7e   :  { %v37_v14 = vpop.permute.xlu0 %36 }
  0x7f   :  { %v38_v15 = vsel %vm31_vm0, %v35_v12, %v37_v14  ;;  %v39_v16 = vsel %vm31_vm0, %v37_v14, %v35_v12 }
  0x80   :  { %v50_v17 = vsub.s32 %v39_v16, %v278_v7  ;;  %v51_v18 = vsub.s32 %v38_v15, %v281_v8  ;;  %v88_v19 = vpop.permute.xlu1 %87 }
  0x81   :  { %v89_v20 = vsel %vm82_vm1, %v86_v13, %v88_v19  ;;  %v90_v21 = vsel %vm82_vm1, %v88_v19, %v86_v13 }
  0x82   :  { %v53_v22 = vsub.s32 0, %v50_v17  ;;  %v56_v23 = vsub.s32 0, %v51_v18  ;;  %v101_v24 = vsub.s32 %v89_v20, %v278_v7  ;;  %v102_v25 = vsub.s32 %v90_v21, %v281_v8  ;;  %v41_v26 = vpop.permute.xlu0 %40 }
  0x83   :  { %v44_v29 = vsel %vm31_vm0, %v41_v26, %v43_v11  ;;  %v45_v30 = vsel %vm31_vm0, %v43_v11, %v41_v26 }
  0x84   :  { %v233_v31 = vmin.u32 %v53_v22, %v50_v17  ;;  %v234_v32 = vmin.u32 %v56_v23, %v51_v18  ;;  %v104_v33 = vsub.s32 0, %v101_v24  ;;  %v107_v34 = vsub.s32 0, %v102_v25  ;;  %v94_v35 = vpop.permute.xlu1 %93 }
  0x85   :  { %v46_v36 = vsub.s32 %v45_v30, %v39_v16  ;;  %v47_v37 = vsub.s32 %v44_v29, %v38_v15 }
  0x86   :  { %vm58_vm2 = vcmp.le.s32.totalorder %v233_v31, 1  ;;  %vm59_vm3 = vcmp.le.s32.totalorder %v234_v32, 1  ;;  %v235_v38 = vmin.u32 %v104_v33, %v101_v24  ;;  %v236_v39 = vmin.u32 %v107_v34, %v102_v25  ;;  %v92_v40 = vpop.permute.xlu0 %91 }
  0x87   :  { %vm48_vm4 = vcmp.eq.s32.totalorder %v46_v36, %v25_v28  ;;  %vm49_vm5 = vcmp.eq.s32.totalorder %v47_v37, %v26_v27  ;;  %v95_v41 = vsel %vm82_vm1, %v92_v40, %v94_v35  ;;  %v96_v42 = vsel %vm82_vm1, %v94_v35, %v92_v40 }
  0x88   :  { %vm60_vm6 = vmand %vm48_vm4, %vm58_vm2  ;;  %v97_v43 = vsub.s32 %v95_v41, %v89_v20  ;;  %v98_v44 = vsub.s32 %v96_v42, %v90_v21  ;;  %v30_v45 = vpop.permute.xlu1 %29  ;;  %vm109_vm7 = vcmp.le.s32.totalorder %v235_v38, 1  ;;  %vm110_vm11 = vcmp.le.s32.totalorder %v236_v39, 1 }
  0x89   :  { %vm61_vm8 = vmand %vm49_vm5, %vm59_vm3  ;;  %v62_v47 = vsel %vm60_vm6, 1, %v250_v46  ;;  %vm182_vm3 = vcmp.lt.s32.totalorder %v266_v1, 112 }
  0x8a   :  { %vm99_vm9 = vcmp.eq.s32.totalorder %v97_v43, %v25_v28  ;;  %vm100_vm10 = vcmp.eq.s32.totalorder %v98_v44, %v26_v27  ;;  %v63_v48 = vsel %vm61_vm8, 1, %v250_v46  ;;  %v28_v49 = vpop.permute.xlu0 %27  ;;  %v67_v50 = vrot.slane %v62_v47, %v274_v5 }
  0x8b   :  { %vm111_vm12 = vmand %vm99_vm9, %vm109_vm7  ;;  %v71_v51 = vrot.slane %v63_v48, %v274_v5  ;;  %v32_v52 = vsel %vm31_vm0, %v28_v49, %v30_v45  ;;  %v33_v53 = vsel %vm31_vm0, %v30_v45, %v28_v49 }
  0x8c   :  { %vm112_vm13 = vmand %vm100_vm10, %vm110_vm11  ;;  %vm72_vm14 = vcmp.eq.s32.totalorder %v67_v50, 1  ;;  %v81_v54 = vpop.permute.xlu1 %80  ;;  %v113_v55 = vsel %vm111_vm12, 1, %v250_v46 }
  0x8d   :  { %vm73_vm15 = vcmp.eq.s32.totalorder %v71_v51, 1  ;;  %v74_v56 = vsel %vm72_vm14, %v33_v53, -inf  ;;  %v114_v57 = vsel %vm112_vm13, 1, %v250_v46  ;;  %v118_v58 = vrot.slane %v113_v55, %v274_v5 }
  0x8e   :  { %v75_v59 = vsel %vm73_vm15, %v32_v52, -inf  ;;  %v122_v60 = vrot.slane %v114_v57, %v274_v5  ;;  %v79_v61 = vpop.permute.xlu0 %78  ;;  %v76_v62 = vmax.f32 %v297_v10, %v74_v56 }
  0x8f   :  { %v83_v63 = vsel %vm82_vm1, %v79_v61, %v81_v54  ;;  %v84_v0 = vsel %vm82_vm1, %v81_v54, %v79_v61  ;;  %vm123_vm0 = vcmp.eq.s32.totalorder %v118_v58, 1  ;;  %v77_v2 = vmax.f32 %v291_v9, %v75_v59 }
  0x90   :  { %vm124_vm2 = vcmp.eq.s32.totalorder %v122_v60, 1  ;;  %v125_v3 = vsel %vm123_vm0, %v83_v63, -inf  ;;  %v145_v9 = vpop.permute.xlu1 %144  ;;  %vm133_vm1 = vcmp.lt.s32.totalorder %v266_v1, 16 }
  0x91   :  { %v126_v6 = vsel %vm124_vm2, %v84_v0, -inf  ;;  %v363_v11 = vmax.f32 %v76_v62, %v125_v3 }
  0x92   :  { %v365_v12 = vmax.f32 %v77_v2, %v126_v6  ;;  %v143_v10 = vpop.permute.xlu0 %142 }
  0x93   :  { %129 = vrot.lane.b32.xlu0 %v363_v11, %s248_s16  ;;  %v147_v13 = vsel %vm133_vm1, %v145_v9, %v143_v10  ;;  %v146_v16 = vsel %vm133_vm1, %v143_v10, %v145_v9 }
  0x94   :  { %131 = vrot.lane.b32.xlu1 %v365_v12, %s248_s16  ;;  %v194_v14 = vpop.permute.xlu1 %193  ;;  %v150_v17 = vsub.s32 %v147_v13, %v266_v1  ;;  %v151_v19 = vsub.s32 %v146_v16, %v272_v4 }
  0x96   :  { %v192_v15 = vpop.permute.xlu0 %191  ;;  %v153_v24 = vsub.s32 0, %v150_v17  ;;  %v156_v26 = vsub.s32 0, %v151_v19 }
  0x97   :  { %178 = vrot.lane.b32.xlu0 %v363_v11, %s249_s17  ;;  %v195_v18 = vsel %vm182_vm3, %v192_v15, %v194_v14  ;;  %v196_v20 = vsel %vm182_vm3, %v194_v14, %v192_v15 }
  0x98   :  { %180 = vrot.lane.b32.xlu1 %v365_v12, %s249_s17  ;;  %v199_v21 = vsub.s32 %v195_v18, %v266_v1  ;;  %v139_v22 = vpop.permute.xlu1 %138  ;;  %v200_v25 = vsub.s32 %v196_v20, %v272_v4  ;;  %v237_v28 = vmin.u32 %v153_v24, %v150_v17  ;;  %v238_v30 = vmin.u32 %v156_v26, %v151_v19 }
  0x9a   :  { %v137_v23 = vpop.permute.xlu0 %136  ;;  %v202_v27 = vsub.s32 0, %v199_v21  ;;  %v205_v29 = vsub.s32 0, %v200_v25  ;;  %vm158_vm4 = vcmp.le.s32.totalorder %v237_v28, 16  ;;  %vm159_vm6 = vcmp.le.s32.totalorder %v238_v30, 16 }
  0x9b   :  { %v141_v31 = vsel %vm133_vm1, %v139_v22, %v137_v23  ;;  %v140_v34 = vsel %vm133_vm1, %v137_v23, %v139_v22 }
  0x9c   :  { %v188_v32 = vpop.permute.xlu1 %187  ;;  %v239_v35 = vmin.u32 %v202_v27, %v199_v21  ;;  %v240_v36 = vmin.u32 %v205_v29, %v200_v25  ;;  %vm148_vm5 = vcmp.eq.s32.totalorder %v141_v31, %v278_v7  ;;  %vm149_vm7 = vcmp.eq.s32.totalorder %v140_v34, %v281_v8 }
  0x9d   :  { %vm160_vm8 = vmand %vm148_vm5, %vm158_vm4 }
  0x9e   :  { %v186_v33 = vpop.permute.xlu0 %185  ;;  %vm207_vm9 = vcmp.le.s32.totalorder %v239_v35, 16  ;;  %vm161_vm11 = vmand %vm149_vm7, %vm159_vm6  ;;  %vm208_vm12 = vcmp.le.s32.totalorder %v240_v36, 16  ;;  %v162_v38 = vsel %vm160_vm8, 1, %v250_v46 }
  0x9f   :  { %v189_v4 = vsel %vm182_vm3, %v186_v33, %v188_v32  ;;  %v190_v37 = vsel %vm182_vm3, %v188_v32, %v186_v33  ;;  %v163_v39 = vsel %vm161_vm11, 1, %v250_v46  ;;  %v167_v42 = vrot.slane %v162_v38, %v274_v5 }
  0xa0   :  { %vm197_vm10 = vcmp.eq.s32.totalorder %v189_v4, %v278_v7  ;;  %vm198_vm13 = vcmp.eq.s32.totalorder %v190_v37, %v281_v8  ;;  %v171_v43 = vrot.slane %v163_v39, %v274_v5 }
  0xa1   :  { %vm209_vm14 = vmand %vm197_vm10, %vm207_vm9  ;;  %vm172_vm0 = vcmp.eq.s32.totalorder %v167_v42, 1 }
  0xa2   :  { %vm210_vm15 = vmand %vm198_vm13, %vm208_vm12  ;;  %v211_v40 = vsel %vm209_vm14, 1, %v250_v46  ;;  %vm173_vm2 = vcmp.eq.s32.totalorder %v171_v43, 1 }
  0xa3   :  { %v212_v41 = vsel %vm210_vm15, 1, %v250_v46  ;;  %v216_v45 = vrot.slane %v211_v40, %v274_v5 }
  0xa4   :  { %v220_v8 = vrot.slane %v212_v41, %v274_v5 }
  0xa5   :  { %vm221_vm4 = vcmp.eq.s32.totalorder %v216_v45, 1 }
  0xa6   :  { %vm222_vm5 = vcmp.eq.s32.totalorder %v220_v8, 1 }
 0x105   :  { %v130_v44 = vpop.permute.xlu0 %129 }
 0x106   :  { %v132_v7 = vpop.permute.xlu1 %131 }
 0x107   :  { %v134_v47 = vsel %vm133_vm1, %v130_v44, %v132_v7  ;;  %v135_v48 = vsel %vm133_vm1, %v132_v7, %v130_v44 }
 0x108   :  { %v174_v49 = vsel %vm172_vm0, %v135_v48, -inf  ;;  %v175_v46 = vsel %vm173_vm2, %v134_v47, -inf }
 0x109   :  { %v179_v50 = vpop.permute.xlu0 %178  ;;  %v176_v52 = vmax.f32 %v363_v11, %v174_v49  ;;  %v177_v53 = vmax.f32 %v365_v12, %v175_v46 }
 0x10a   :  { %v181_v51 = vpop.permute.xlu1 %180 }
 0x10b   :  { %v183_v5 = vsel %vm182_vm3, %v179_v50, %v181_v51  ;;  %v184_v54 = vsel %vm182_vm3, %v181_v51, %v179_v50 }
 0x10c   :  { %v223_v55 = vsel %vm221_vm4, %v183_v5, -inf  ;;  %v224_v56 = vsel %vm222_vm5, %v184_v54, -inf }
 0x10d   :  { %v225_v57 = vmax.f32 %v176_v52, %v223_v55  ;;  %v226_v58 = vmax.f32 %v177_v53, %v224_v56 }
 0x10f   :  { %227 = vst [vmem:[%s427_s2] sm:$0xff] %v225_v57  ;;  %228 = vst [vmem:[%s427_s2 + $0x8] sm:$0xff] %v226_v58 }

</bundles_post_ra>
